<compile_context>
chip_gen: v7x
topology: tpu7x:2x2x1
jax: 0.10.0
libtpu: 0.0.40
codegen_flags: <defaults>
</compile_context>

<pallas_src>
import jax
import jax.numpy as jnp
from jax.experimental import pallas as pl
from jax.experimental.pallas import tpu as pltpu

_SAFE_LOG_EPS = 1e-7


def _planar_logdet_kernel(z_ref, w_ref, sc_ref, o_ref):
    # z tile: (TB, D) in its native dtype; cast AFTER it is in VMEM.
    z = z_ref[...].astype(jnp.float32)          # (TB, D)
    w = w_ref[...].astype(jnp.float32)          # (1, D), resident across tiles
    bias = sc_ref[0]                            # scalar (SMEM)
    ws = sc_ref[1]                              # scalar = sum(weight * scale)

    # activation = z @ w.T + b   -> lane (XLU) reduction, stays off the MXU.
    act = jnp.sum(z * w, axis=-1, keepdims=True) + bias     # (TB, 1)
    t = jnp.tanh(act)
    sech2 = 1.0 - t * t                                     # (TB, 1)

    # det = 1 + (sech2 * w) @ scale.T  ==  1 + sech2 * (w . scale)
    det = 1.0 + sech2 * ws                                   # (TB, 1)
    o_ref[...] = jnp.log(jnp.abs(det) + _SAFE_LOG_EPS)


def _choose_batch_tile(B, D, itemsize):
    """Largest multiple-of-8 batch tile whose double-buffered z stream stays
    ~<= 8 MiB (safe under v5e's 16 MiB default scoped VMEM and v7x's tighter
    per-core budget), capped at 512 rows."""
    if B <= 8:
        return B
    budget_bytes = 8 * 1024 * 1024
    max_rows = max(8, budget_bytes // (2 * D * itemsize))
    tb = min(B, 512, max_rows)
    tb = max(8, (tb // 8) * 8)
    return B if tb >= B else tb


def planar_flow_logdet(z, weight, bias, scale):
    """z: (B, D); weight, scale: (1, D); bias: (1,)  ->  (B, 1) f32."""
    B, D = z.shape
    w32 = weight.astype(jnp.float32)
    s32 = scale.astype(jnp.float32)
    ws = jnp.sum(w32 * s32)                                  # scalar w . scale
    scalars = jnp.stack([bias.astype(jnp.float32).reshape(()), ws])  # (2,)

    tb = _choose_batch_tile(B, D, jnp.dtype(z.dtype).itemsize)
    grid = (pl.cdiv(B, tb),)

    return pl.pallas_call(
        _planar_logdet_kernel,
        out_shape=jax.ShapeDtypeStruct((B, 1), jnp.float32),
        grid_spec=pltpu.PrefetchScalarGridSpec(
            num_scalar_prefetch=0,
            grid=grid,
            in_specs=[
                pl.BlockSpec((tb, D), lambda i: (i, 0)),               # z (streamed)
                pl.BlockSpec((1, D), lambda i: (0, 0)),                # weight (resident)
                pl.BlockSpec(memory_space=pltpu.MemorySpace.SMEM),     # [bias, w.scale]
            ],
            out_specs=pl.BlockSpec((tb, 1), lambda i: (i, 0)),
        ),
        compiler_params=pltpu.CompilerParams(
            dimension_semantics=("parallel",)),
    )(z, w32, scalars)


def planar_flow_logdet_ref(z, weight, bias, scale):
    """Pure-JAX reference matching the PyTorch forward exactly (full math)."""
    z = z.astype(jnp.float32)
    weight = weight.astype(jnp.float32)
    bias = bias.astype(jnp.float32)
    scale = scale.astype(jnp.float32)
    activation = z @ weight.T + bias                        # (B, 1)
    psi = (1.0 - jnp.tanh(activation) ** 2) * weight        # (B, D)
    det_grad = 1.0 + psi @ scale.T                          # (B, 1)
    return jnp.log(jnp.abs(det_grad) + _SAFE_LOG_EPS)


if __name__ == "__main__":
    key = jax.random.PRNGKey(0)
    kz, kw, kb, ks = jax.random.split(key, 4)

    # Small case (single tile), f32.
    B, D = 8, 32
    z = jax.random.normal(kz, (B, D), dtype=jnp.float32)
    weight = 0.1 * jax.random.normal(kw, (1, D), dtype=jnp.float32)
    bias = 0.1 * jax.random.normal(kb, (1,), dtype=jnp.float32)
    scale = 0.1 * jax.random.normal(ks, (1, D), dtype=jnp.float32)

    out = jax.block_until_ready(planar_flow_logdet(z, weight, bias, scale))
    ref = planar_flow_logdet_ref(z, weight, bias, scale)
    assert out.shape == (B, 1), out.shape
    assert jnp.allclose(out, ref, atol=1e-5, rtol=1e-5), (out, ref)

    # Multi-tile case with a tail tile (B % TB != 0) and bf16 z (cast in-kernel).
    B2, D2 = 528, 256
    kz2, kw2, kb2, ks2 = jax.random.split(jax.random.PRNGKey(0), 4)
    z2 = jax.random.normal(kz2, (B2, D2), dtype=jnp.float32).astype(jnp.bfloat16)
    weight2 = 0.05 * jax.random.normal(kw2, (1, D2), dtype=jnp.float32)
    bias2 = 0.1 * jax.random.normal(kb2, (1,), dtype=jnp.float32)
    scale2 = 0.05 * jax.random.normal(ks2, (1, D2), dtype=jnp.float32)

    out2 = jax.block_until_ready(planar_flow_logdet(z2, weight2, bias2, scale2))
    ref2 = planar_flow_logdet_ref(z2, weight2, bias2, scale2)
    assert out2.shape == (B2, 1), out2.shape
    assert jnp.allclose(out2, ref2, atol=1e-4, rtol=1e-4)

    print("KERNEL_OK")
</pallas_src>

<mosaic_0001>
module attributes {stable_mosaic.version = 11 : i64} {
  func.func @_planar_logdet_kernel(%arg0: i32, %arg1: memref<8x32xf32, #tpu.memory_space<vmem>>, %arg2: memref<1x32xf32, #tpu.memory_space<vmem>>, %arg3: memref<2xf32, #tpu.memory_space<smem>>, %arg4: memref<8x1xf32, #tpu.memory_space<vmem>>) attributes {dimension_semantics = [#tpu.dimension_semantics<parallel>], iteration_bounds = array<i64: 1>, scalar_prefetch = 0 : i64, scratch_operands = 0 : i64, tpu.core_type = #tpu.core_type<tc>, window_params = [{transform_indices = @transform_0, window_bounds = array<i64: 8, 32>}, {pipeline_mode = #tpu.pipeline_mode<synchronous>, transform_indices = @transform_1, window_bounds = array<i64: 1, 32>}, {transform_indices = @transform_2, window_bounds = array<i64: 2>}, {transform_indices = @transform_3, window_bounds = array<i64: 8, 1>}]} {
    %c0 = arith.constant 0 : index
    %c0_0 = arith.constant 0 : index
    %0 = vector.load %arg1[%c0, %c0_0] : memref<8x32xf32, #tpu.memory_space<vmem>>, vector<8x32xf32>
    %c0_1 = arith.constant 0 : index
    %c0_2 = arith.constant 0 : index
    %1 = vector.load %arg2[%c0_1, %c0_2] : memref<1x32xf32, #tpu.memory_space<vmem>>, vector<1x32xf32>
    %c0_3 = arith.constant 0 : index
    %2 = memref.load %arg3[%c0_3] : memref<2xf32, #tpu.memory_space<smem>>
    %c1 = arith.constant 1 : index
    %3 = memref.load %arg3[%c1] : memref<2xf32, #tpu.memory_space<smem>>
    %4 = vector.broadcast %1 : vector<1x32xf32> to vector<8x32xf32>
    %5 = arith.mulf %0, %4 : vector<8x32xf32>
    %cst = arith.constant dense<0.000000e+00> : vector<8xf32>
    %6 = vector.multi_reduction <add>, %5, %cst [1] : vector<8x32xf32> to vector<8xf32>
    %7 = vector.shape_cast %6 : vector<8xf32> to vector<8x1xf32>
    %8 = vector.broadcast %2 : f32 to vector<8x1xf32>
    %9 = arith.addf %7, %8 : vector<8x1xf32>
    %10 = math.tanh %9 : vector<8x1xf32>
    %11 = arith.mulf %10, %10 : vector<8x1xf32>
    %cst_4 = arith.constant 1.000000e+00 : f32
    %12 = vector.broadcast %cst_4 : f32 to vector<8x1xf32>
    %13 = arith.subf %12, %11 : vector<8x1xf32>
    %14 = vector.broadcast %3 : f32 to vector<8x1xf32>
    %15 = arith.mulf %13, %14 : vector<8x1xf32>
    %cst_5 = arith.constant 1.000000e+00 : f32
    %16 = vector.broadcast %cst_5 : f32 to vector<8x1xf32>
    %17 = arith.addf %16, %15 : vector<8x1xf32>
    %18 = math.absf %17 : vector<8x1xf32>
    %cst_6 = arith.constant 1.000000e-07 : f32
    %19 = vector.broadcast %cst_6 : f32 to vector<8x1xf32>
    %20 = arith.addf %18, %19 : vector<8x1xf32>
    %21 = math.log %20 : vector<8x1xf32>
    %c0_7 = arith.constant 0 : index
    %c0_8 = arith.constant 0 : index
    %22 = vector.load %arg4[%c0_7, %c0_8] : memref<8x1xf32, #tpu.memory_space<vmem>>, vector<8x1xf32>
    tpu.vector_store %arg4[%c0_7, %c0_8], %21 {strides = array<i32>} : memref<8x1xf32, #tpu.memory_space<vmem>>, vector<8x1xf32>,
    return
  }
  func.func @transform_0(%arg0: i32) -> (i32, i32) {
    %c0_i32 = arith.constant 0 : i32
    %c0_i32_0 = arith.constant 0 : i32
    return %arg0, %c0_i32 : i32, i32
  }
  func.func @transform_1(%arg0: i32) -> (i32, i32) {
    %c0_i32 = arith.constant 0 : i32
    %c0_i32_0 = arith.constant 0 : i32
    %c0_i32_1 = arith.constant 0 : i32
    return %c0_i32, %c0_i32_0 : i32, i32
  }
  func.func @transform_2(%arg0: i32) -> i32 {
    %c0_i32 = arith.constant 0 : i32
    %c0_i32_0 = arith.constant 0 : i32
    return %c0_i32 : i32
  }
  func.func @transform_3(%arg0: i32) -> (i32, i32) {
    %c0_i32 = arith.constant 0 : i32
    %c0_i32_0 = arith.constant 0 : i32
    return %arg0, %c0_i32 : i32, i32
  }
}

</mosaic_0001>

<bundles_post_ra>
// kernel: tpu_custom_call.1
= control target key start
LH: loop header
LB: loop body
LE: loop exit
PB: predicated region body
PF: predicated region fallthrough
CT: control target
= control target key end

     0   :  { %8 = vsyncpa [#allocation3], 0  ;;  %s163_s0 = inlined_call_operand.hbm [shape: f32[8,32], index: 0, kind: input, shape index: {}]   ;;  %s164_s1 = inlined_call_operand.vmem [shape: f32[1,32], index: 1, kind: input, shape index: {}]   ;;  %s165_s2 = inlined_call_operand.vmem [shape: f32[2], index: 2, kind: input, shape index: {}]   ;;  %s166_s3 = inlined_call_operand.vmem [shape: f32[8,1], index: 3, kind: output, shape index: {}]  }
   0x1   :  { %9 = vsyncpa [#allocation4], 0  ;;  %s28_s14 = sshll.u32 %s165_s2, 4  ;;  %s120_s15 = smov [#allocation2]   ;;  %s29_s14 = int_to_ptr.vmem [resolvable:$true] %s28_s14 }
   0x2   :  { %s16_s16 = sshll.u32 %s120_s15, 4  ;;  %s82_s19 = scalar_lea.hbm %s163_s0, 128  ;;  %s17_s16 = int_to_ptr.vmem [resolvable:$true] %s16_s16 }
   0x3   :  { %p83_p0 = scmp.ne.s32.totalorder %s163_s0, %s82_s19  ;;  %p86_p1 = scmp.lt.u32.totalorder %s82_s19, %s163_s0 }
   0x5   :  { %p88_p2 = pnand %p86_p1, %p83_p0 }
   0x7   :  { %91 = shalt.err (!%p88_p2)
}
   0x8   :  { %s92_s24 = scalar_lea.vmem %s17_s16, 128  ;;  %p97_p4 = scmp.lt.s32.totalorder %s17_s16, %s17_s16 }
   0x9   :  { %p93_p3 = scmp.ne.s32.totalorder %s17_s16, %s92_s24  ;;  %p98_p5 = scmp.lt.s32.totalorder %s92_s24, %s92_s24 }
   0xb   :  { %p99_p6 = por %p98_p5, %p97_p4 }
   0xd   :  { %p100_p7 = pnand %p99_p6, %p93_p3 }
   0xf   :  { %103 = shalt.err (!%p100_p7)
}
  0x10   :  { %19 = dma.hbm_to_vmem [thread:$0]  %s163_s0, 128, %s17_s16, [#allocation3]  }
  0x11   :  { %s104_s26 = scalar_lea.vmem %s29_s14, 16  ;;  %p109_p9 = scmp.lt.s32.totalorder %s29_s14, %s29_s14 }
  0x12   :  { %p105_p8 = scmp.ne.s32.totalorder %s29_s14, %s104_s26  ;;  %p110_p10 = scmp.lt.s32.totalorder %s104_s26, %s104_s26 }
  0x14   :  { %p111_p11 = por %p110_p10, %p109_p9 }
  0x16   :  { %p112_p12 = pnand %p111_p11, %p105_p8 }
  0x18   :  { %115 = shalt.err (!%p112_p12)
}
  0x19   :  { %s121_s27 = smov [#allocation5]  }
  0x1a   :  { %31 = dma.vmem_to_smem %s29_s14, 16, %s121_s27, [#allocation4]  }
  0x1b   :  { %116 = dma.done.wait [#allocation3], 128  }
  0x1c   :  { %117 = vsyncadd [#allocation3], 4294967168 }
  0x1d   :  { %118 = dma.done.wait [#allocation4], 16  }
  0x1e   :  { %119 = vsyncadd [#allocation4], 4294967280 }
  0x1f   :  { %38 = sfence }
  0x20   :  { %v39_v0 = vld [vmem:[#allocation2] sm:$0xff]  ;;  %v75_v1 = vld [vmem:[%s164_s1] ss:$0 sm:$0xff]  ;;  %vm50_vm0 = vcmask 261120   ;;  %s41_s0 = sld [smem:[#allocation5]]  ;;  %s74_s30 = sld [smem:[#allocation5 + $0x1]] }
  0x21   :  { %v49_v2 = vmul.f32 %v75_v1, %v39_v0  ;;  %vm66_vm1 = vcmask 7168  }
  0x23   :  { %v51_v3 = vsel %vm50_vm0, %v49_v2, 0.0 }
  0x24   :  { %52 = vadd.xlane.f32.xlu0 %v51_v3 }
  0x26   :  { %v54_v4 = vstv %s41_s0  ;;  %v59_v9 = vstv %s74_s30 }
  0xb1   :  { %v53_v5 = vpop.xlane.xlu0 %52 }
  0xb2   :  { %v55_v6 = vadd.f32 %v54_v4, %v53_v5 }
  0xb4   :  { %78 = vtanh.f32 %v55_v6 }
  0xbe   :  { %v79_v7 = vpop.eup %78 }
  0xbf   :  { %v57_v8 = vmul.f32 %v79_v7, %v79_v7 }
  0xc1   :  { %v58_v10 = vsub.f32 1.0, %v57_v8 }
  0xc3   :  { %v60_v11 = vmul.f32 %v59_v9, %v58_v10 }
  0xc5   :  { %v61_v12 = vadd.f32 1.0, %v60_v11 }
  0xc7   :  { %v62_v13 = vand.u32 2147483647, %v61_v12 }
  0xc9   :  { %v63_v14 = vadd.f32 1e-07, %v62_v13 }
  0xcb   :  { %80 = vlog2.f32 %v63_v14 }
  0xd5   :  { %v81_v15 = vpop.eup %80 }
  0xd6   :  { %v65_v16 = vmul.f32 0.6931472, %v81_v15 }
  0xd8   :  { %67 = vst.msk [vmem:[%s166_s3] sm:$0xff] %vm66_vm1, %v65_v16 }
  0xd9   :  { %72 = vsyncpa [#allocation3], 1 }
  0xda   :  { %73 = vsyncpa [#allocation4], 1 }

</bundles_post_ra>
